<compile_context>
chip_gen: v7x
topology: tpu7x:2x2x1
jax: 0.10.0
libtpu: 0.0.40
codegen_flags: <defaults>
</compile_context>

<pallas_src>
import functools

import jax
import jax.numpy as jnp
from jax import lax
from jax.experimental import pallas as pl
from jax.experimental.pallas import tpu as pltpu

OUT_PAD = 8   # padded width of the 2-wide final layer (mean, log_std, zeros...)
LANE = 128
TM_CAP = 1024  # per-tile row cap (keeps v5e f32-MXU time below DMA time)


def _round_up(x, m):
    return ((x + m - 1) // m) * m


def _pick_tm(b):
    """Tile rows: 8-row minimum; for big batches aim for >=2 tiles (v7x has 2 TCs)
    while amortizing per-grid-step overhead; cap at TM_CAP."""
    if b <= 8:
        return 8
    tm = _round_up(pl.cdiv(b, 2), 8)
    return min(tm, TM_CAP)


# --------------------------------------------------------------------------- #
# Kernel
# --------------------------------------------------------------------------- #
def actor_kernel(x_ref, w1_ref, b1_ref, w2_ref, b2_ref, w3_ref, b3_ref, out_ref):
    x = x_ref[...]                                                        # (TM, in)
    h1 = jnp.dot(x, w1_ref[...], preferred_element_type=jnp.float32)     # (TM, H0)
    h1 = jnp.maximum(h1 + b1_ref[...], 0.0)                              # ReLU
    h2 = jnp.dot(h1, w2_ref[...], preferred_element_type=jnp.float32)    # (TM, H1)
    h2 = jnp.maximum(h2 + b2_ref[...], 0.0)                              # ReLU
    o = jnp.dot(h2, w3_ref[...], preferred_element_type=jnp.float32)     # (TM, OUT_PAD)
    o = o + b3_ref[...]
    # column 0 -> mean (identity), column 1 -> std = exp(log_std).
    # Row-vector mask (1, OUT_PAD) broadcast against o; exp runs on the EUP slot
    # over just TM x 8 elements.
    col = lax.broadcasted_iota(jnp.int32, (1, o.shape[1]), 1)
    out_ref[...] = jnp.where(col == 1, jnp.exp(o), o)


# --------------------------------------------------------------------------- #
# Parameter preparation (done ONCE, off the hot path)
# --------------------------------------------------------------------------- #
def prepare_params(params):
    """Pad weights to lane-dense layouts. Call once and cache."""
    w1, b1, w2, b2, w3, b3 = params
    in_size, h0 = w1.shape
    h1 = w2.shape[1]
    H0 = _round_up(h0, LANE)
    H1 = _round_up(h1, LANE)

    f32 = jnp.float32
    w1p = jnp.zeros((in_size, H0), f32).at[:, :h0].set(w1.astype(f32))
    b1p = jnp.zeros((1, H0), f32).at[0, :h0].set(b1.astype(f32))
    w2p = jnp.zeros((H0, H1), f32).at[:h0, :h1].set(w2.astype(f32))
    b2p = jnp.zeros((1, H1), f32).at[0, :h1].set(b2.astype(f32))
    w3p = jnp.zeros((H1, OUT_PAD), f32).at[:h1, :2].set(w3.astype(f32))
    b3p = jnp.zeros((1, OUT_PAD), f32).at[0, :2].set(b3.astype(f32))
    return (w1p, b1p, w2p, b2p, w3p, b3p)


# --------------------------------------------------------------------------- #
# Forward passes
# --------------------------------------------------------------------------- #
@functools.partial(jax.jit, static_argnames=("tm",))
def _actor_pallas(states, w1p, b1p, w2p, b2p, w3p, b3p, *, tm):
    """Pad -> pallas_call -> slice, all fused under one jit dispatch.

    states: (B, in_size). Returns (mean[B], std[B])."""
    states = states.astype(jnp.float32)
    b, in_size = states.shape
    bp = _round_up(max(b, 1), tm)
    x = jnp.zeros((bp, in_size), jnp.float32).at[:b].set(states)

    def inv2d(shape):
        # grid-invariant full-array block (weights/biases stay VMEM-resident
        # across the whole grid; the pipeline does not re-fetch them per tile).
        return pl.BlockSpec(shape, lambda i: (0, 0))

    out = pl.pallas_call(
        actor_kernel,
        out_shape=jax.ShapeDtypeStruct((bp, OUT_PAD), jnp.float32),
        grid_spec=pltpu.PrefetchScalarGridSpec(
            num_scalar_prefetch=0,
            grid=(bp // tm,),
            in_specs=[
                pl.BlockSpec((tm, in_size), lambda i: (i, 0)),
                inv2d(w1p.shape),
                inv2d(b1p.shape),
                inv2d(w2p.shape),
                inv2d(b2p.shape),
                inv2d(w3p.shape),
                inv2d(b3p.shape),
            ],
            out_specs=pl.BlockSpec((tm, OUT_PAD), lambda i: (i, 0)),
        ),
        compiler_params=pltpu.CompilerParams(
            dimension_semantics=("parallel",),  # shard batch tiles across TCs (v7x)
        ),
    )(x, w1p, b1p, w2p, b2p, w3p, b3p)

    return out[:b, 0], out[:b, 1]


def actor_forward_batched(states, prepared, *, tm=None):
    """states: (B, in_size). Returns (mean[B], std[B])."""
    states = jnp.asarray(states, jnp.float32)
    if tm is None:
        tm = _pick_tm(states.shape[0])
    return _actor_pallas(states, *prepared, tm=tm)


def actor_forward(state, prepared):
    """Single state vector -> (mean, std) of the Normal distribution."""
    mean, std = actor_forward_batched(jnp.asarray(state).reshape(1, -1), prepared, tm=8)
    return mean[0], std[0]


# --------------------------------------------------------------------------- #
# Reference + params
# --------------------------------------------------------------------------- #
def init_params(key, input_size, hidden_size):
    """Deterministic synthetic parameters; shapes match the PyTorch module
    (weights stored [in, out] = transpose of nn.Linear's [out, in])."""
    k1, k2, k3, k4, k5, k6 = jax.random.split(key, 6)
    w1 = 0.1 * jax.random.normal(k1, (input_size, hidden_size[0]), jnp.float32)
    b1 = 0.1 * jax.random.normal(k2, (hidden_size[0],), jnp.float32)
    w2 = 0.1 * jax.random.normal(k3, (hidden_size[0], hidden_size[1]), jnp.float32)
    b2 = 0.1 * jax.random.normal(k4, (hidden_size[1],), jnp.float32)
    w3 = 0.1 * jax.random.normal(k5, (hidden_size[1], 2), jnp.float32)
    b3 = 0.1 * jax.random.normal(k6, (2,), jnp.float32)
    return (w1, b1, w2, b2, w3, b3)


def reference_forward_batched(states, params):
    """Pure-JAX reference mirroring the PyTorch forward (per row)."""
    w1, b1, w2, b2, w3, b3 = params
    h = jnp.maximum(states @ w1 + b1, 0.0)
    h = jnp.maximum(h @ w2 + b2, 0.0)
    o = h @ w3 + b3
    return o[:, 0], jnp.exp(o[:, 1])


# --------------------------------------------------------------------------- #
if __name__ == "__main__":
    input_size = 8
    hidden_size = [32, 32]

    key = jax.random.PRNGKey(0)
    k_params, k_state, k_batch, k_big = jax.random.split(key, 4)
    params = init_params(k_params, input_size, hidden_size)
    prepared = prepare_params(params)           # padding hoisted off the hot path

    # --- single-state path (matches the PyTorch module's forward), tm=8 ---
    state = jax.random.normal(k_state, (input_size,), jnp.float32)
    mean, std = actor_forward(state, prepared)
    mean = jax.block_until_ready(mean)
    std = jax.block_until_ready(std)
    ref_mean, ref_std = reference_forward_batched(state.reshape(1, -1), params)
    assert jnp.allclose(mean, ref_mean[0], atol=1e-5, rtol=1e-5), (mean, ref_mean[0])
    assert jnp.allclose(std, ref_std[0], atol=1e-5, rtol=1e-5), (std, ref_std[0])
    assert bool(std > 0.0)

    # --- small batched path (one 8-row tile) ---
    states_small = jax.random.normal(k_batch, (8, input_size), jnp.float32)
    m_b, s_b = actor_forward_batched(states_small, prepared)
    m_b = jax.block_until_ready(m_b)
    s_b = jax.block_until_ready(s_b)
    rm, rs = reference_forward_batched(states_small, params)
    assert jnp.allclose(m_b, rm, atol=1e-5, rtol=1e-5)
    assert jnp.allclose(s_b, rs, atol=1e-5, rtol=1e-5)

    # --- multi-tile batched path (tm=B/2 -> grid=2, "parallel" batch axis) ---
    states_big = jax.random.normal(k_batch, (256, input_size), jnp.float32)
    m_g, s_g = actor_forward_batched(states_big, prepared)
    m_g = jax.block_until_ready(m_g)
    s_g = jax.block_until_ready(s_g)
    rm_g, rs_g = reference_forward_batched(states_big, params)
    assert jnp.allclose(m_g, rm_g, atol=1e-5, rtol=1e-5)
    assert jnp.allclose(s_g, rs_g, atol=1e-5, rtol=1e-5)
    assert bool(jnp.all(s_g > 0.0))

    # --- large, non-multiple batch (exercises in-jit padding + big tiles) ---
    states_huge = jax.random.normal(k_big, (2000, input_size), jnp.float32)
    m_h, s_h = actor_forward_batched(states_huge, prepared)
    m_h = jax.block_until_ready(m_h)
    s_h = jax.block_until_ready(s_h)
    rm_h, rs_h = reference_forward_batched(states_huge, params)
    assert jnp.allclose(m_h, rm_h, atol=1e-5, rtol=1e-5)
    assert jnp.allclose(s_h, rs_h, atol=1e-5, rtol=1e-5)

    print("KERNEL_OK")
</pallas_src>

<mosaic_0001>
module attributes {stable_mosaic.version = 11 : i64} {
  func.func @actor_kernel(%arg0: i32, %arg1: memref<8x8xf32, #tpu.memory_space<vmem>>, %arg2: memref<8x128xf32, #tpu.memory_space<vmem>>, %arg3: memref<1x128xf32, #tpu.memory_space<vmem>>, %arg4: memref<128x128xf32, #tpu.memory_space<vmem>>, %arg5: memref<1x128xf32, #tpu.memory_space<vmem>>, %arg6: memref<128x8xf32, #tpu.memory_space<vmem>>, %arg7: memref<1x8xf32, #tpu.memory_space<vmem>>, %arg8: memref<8x8xf32, #tpu.memory_space<vmem>>) attributes {dimension_semantics = [#tpu.dimension_semantics<parallel>], iteration_bounds = array<i64: 1>, scalar_prefetch = 0 : i64, scratch_operands = 0 : i64, tpu.core_type = #tpu.core_type<tc>, window_params = [{transform_indices = @transform_0, window_bounds = array<i64: 8, 8>}, {pipeline_mode = #tpu.pipeline_mode<synchronous>, transform_indices = @transform_1, window_bounds = array<i64: 8, 128>}, {pipeline_mode = #tpu.pipeline_mode<synchronous>, transform_indices = @transform_2, window_bounds = array<i64: 1, 128>}, {pipeline_mode = #tpu.pipeline_mode<synchronous>, transform_indices = @transform_3, window_bounds = array<i64: 128, 128>}, {pipeline_mode = #tpu.pipeline_mode<synchronous>, transform_indices = @transform_4, window_bounds = array<i64: 1, 128>}, {pipeline_mode = #tpu.pipeline_mode<synchronous>, transform_indices = @transform_5, window_bounds = array<i64: 128, 8>}, {pipeline_mode = #tpu.pipeline_mode<synchronous>, transform_indices = @transform_6, window_bounds = array<i64: 1, 8>}, {transform_indices = @transform_7, window_bounds = array<i64: 8, 8>}]} {
    %c0 = arith.constant 0 : index
    %c0_0 = arith.constant 0 : index
    %0 = vector.load %arg1[%c0, %c0_0] : memref<8x8xf32, #tpu.memory_space<vmem>>, vector<8x8xf32>
    %c0_1 = arith.constant 0 : index
    %c0_2 = arith.constant 0 : index
    %1 = vector.load %arg2[%c0_1, %c0_2] : memref<8x128xf32, #tpu.memory_space<vmem>>, vector<8x128xf32>
    %cst = arith.constant dense<0.000000e+00> : vector<8x128xf32>
    %2 = tpu.matmul %0, %1, %cst {dimension_numbers = #tpu.dot_dimension_numbers<[1], [0], [0], [1], [0, 0, 1, 1], [], []>} : vector<8x8xf32>, vector<8x128xf32>, vector<8x128xf32> -> vector<8x128xf32>
    %c0_3 = arith.constant 0 : index
    %c0_4 = arith.constant 0 : index
    %3 = vector.load %arg3[%c0_3, %c0_4] : memref<1x128xf32, #tpu.memory_space<vmem>>, vector<1x128xf32>
    %4 = vector.broadcast %3 : vector<1x128xf32> to vector<8x128xf32>
    %5 = arith.addf %2, %4 : vector<8x128xf32>
    %cst_5 = arith.constant 0.000000e+00 : f32
    %6 = vector.broadcast %cst_5 : f32 to vector<8x128xf32>
    %7 = arith.maximumf %5, %6 : vector<8x128xf32>
    %c0_6 = arith.constant 0 : index
    %c0_7 = arith.constant 0 : index
    %8 = vector.load %arg4[%c0_6, %c0_7] : memref<128x128xf32, #tpu.memory_space<vmem>>, vector<128x128xf32>
    %cst_8 = arith.constant dense<0.000000e+00> : vector<8x128xf32>
    %9 = tpu.matmul %7, %8, %cst_8 {dimension_numbers = #tpu.dot_dimension_numbers<[1], [0], [0], [1], [0, 0, 1, 1], [], []>} : vector<8x128xf32>, vector<128x128xf32>, vector<8x128xf32> -> vector<8x128xf32>
    %c0_9 = arith.constant 0 : index
    %c0_10 = arith.constant 0 : index
    %10 = vector.load %arg5[%c0_9, %c0_10] : memref<1x128xf32, #tpu.memory_space<vmem>>, vector<1x128xf32>
    %11 = vector.broadcast %10 : vector<1x128xf32> to vector<8x128xf32>
    %12 = arith.addf %9, %11 : vector<8x128xf32>
    %cst_11 = arith.constant 0.000000e+00 : f32
    %13 = vector.broadcast %cst_11 : f32 to vector<8x128xf32>
    %14 = arith.maximumf %12, %13 : vector<8x128xf32>
    %c0_12 = arith.constant 0 : index
    %c0_13 = arith.constant 0 : index
    %15 = vector.load %arg6[%c0_12, %c0_13] : memref<128x8xf32, #tpu.memory_space<vmem>>, vector<128x8xf32>
    %cst_14 = arith.constant dense<0.000000e+00> : vector<8x8xf32>
    %16 = tpu.matmul %14, %15, %cst_14 {dimension_numbers = #tpu.dot_dimension_numbers<[1], [0], [0], [1], [0, 0, 1, 1], [], []>} : vector<8x128xf32>, vector<128x8xf32>, vector<8x8xf32> -> vector<8x8xf32>
    %c0_15 = arith.constant 0 : index
    %c0_16 = arith.constant 0 : index
    %17 = vector.load %arg7[%c0_15, %c0_16] : memref<1x8xf32, #tpu.memory_space<vmem>>, vector<1x8xf32>
    %18 = vector.broadcast %17 : vector<1x8xf32> to vector<8x8xf32>
    %19 = arith.addf %16, %18 : vector<8x8xf32>
    %20 = tpu.iota {dimensions = array<i32: 1>} : vector<1x8xi32>
    %c1_i32 = arith.constant 1 : i32
    %21 = vector.broadcast %c1_i32 : i32 to vector<1x8xi32>
    %22 = arith.cmpi eq, %20, %21 : vector<1x8xi32>
    %23 = math.exp %19 : vector<8x8xf32>
    %24 = vector.shape_cast %22 : vector<1x8xi1> to vector<1x8xi1>
    %25 = vector.broadcast %24 : vector<1x8xi1> to vector<8x8xi1>
    %26 = arith.select %25, %23, %19 : vector<8x8xi1>, vector<8x8xf32>
    %c0_17 = arith.constant 0 : index
    %c0_18 = arith.constant 0 : index
    %27 = vector.load %arg8[%c0_17, %c0_18] : memref<8x8xf32, #tpu.memory_space<vmem>>, vector<8x8xf32>
    tpu.vector_store %arg8[%c0_17, %c0_18], %26 {strides = array<i32>} : memref<8x8xf32, #tpu.memory_space<vmem>>, vector<8x8xf32>,
    return
  }
  func.func @transform_0(%arg0: i32) -> (i32, i32) {
    %c0_i32 = arith.constant 0 : i32
    %c0_i32_0 = arith.constant 0 : i32
    return %arg0, %c0_i32 : i32, i32
  }
  func.func @transform_1(%arg0: i32) -> (i32, i32) {
    %c0_i32 = arith.constant 0 : i32
    %c0_i32_0 = arith.constant 0 : i32
    %c0_i32_1 = arith.constant 0 : i32
    return %c0_i32, %c0_i32_0 : i32, i32
  }
  func.func @transform_2(%arg0: i32) -> (i32, i32) {
    %c0_i32 = arith.constant 0 : i32
    %c0_i32_0 = arith.constant 0 : i32
    %c0_i32_1 = arith.constant 0 : i32
    return %c0_i32, %c0_i32_0 : i32, i32
  }
  func.func @transform_3(%arg0: i32) -> (i32, i32) {
    %c0_i32 = arith.constant 0 : i32
    %c0_i32_0 = arith.constant 0 : i32
    %c0_i32_1 = arith.constant 0 : i32
    return %c0_i32, %c0_i32_0 : i32, i32
  }
  func.func @transform_4(%arg0: i32) -> (i32, i32) {
    %c0_i32 = arith.constant 0 : i32
    %c0_i32_0 = arith.constant 0 : i32
    %c0_i32_1 = arith.constant 0 : i32
    return %c0_i32, %c0_i32_0 : i32, i32
  }
  func.func @transform_5(%arg0: i32) -> (i32, i32) {
    %c0_i32 = arith.constant 0 : i32
    %c0_i32_0 = arith.constant 0 : i32
    %c0_i32_1 = arith.constant 0 : i32
    return %c0_i32, %c0_i32_0 : i32, i32
  }
  func.func @transform_6(%arg0: i32) -> (i32, i32) {
    %c0_i32 = arith.constant 0 : i32
    %c0_i32_0 = arith.constant 0 : i32
    %c0_i32_1 = arith.constant 0 : i32
    return %c0_i32, %c0_i32_0 : i32, i32
  }
  func.func @transform_7(%arg0: i32) -> (i32, i32) {
    %c0_i32 = arith.constant 0 : i32
    %c0_i32_0 = arith.constant 0 : i32
    return %arg0, %c0_i32 : i32, i32
  }
}

</mosaic_0001>

<bundles_post_ra>
// kernel: _actor_pallas.1
= control target key start
LH: loop header
LB: loop body
LE: loop exit
PB: predicated region body
PF: predicated region fallthrough
CT: control target
= control target key end

     0   :  { %vm35_vm0 = vcmask 64512   ;;  %v478_v0 = vmov 0.0   ;;  %vm479_vm1 = vmmov 0   ;;  %v480_v4 = vmov 0.0|0.0   ;;  %s653_s1 = inlined_call_operand.vmem [shape: f32[8,128], index: 1, kind: input, shape index: {}]   ;;  %s654_s0 = inlined_call_operand.vmem [shape: f32[8,8], index: 0, kind: input, shape index: {}]   ;;  %s655_s3 = inlined_call_operand.vmem [shape: f32[128,128], index: 3, kind: input, shape index: {}]   ;;  %s656_s5 = inlined_call_operand.vmem [shape: f32[128,8], index: 5, kind: input, shape index: {}]   ;;  %s657_s2 = inlined_call_operand.vmem [shape: f32[1,128], index: 2, kind: input, shape index: {}]   ;;  %s658_s4 = inlined_call_operand.vmem [shape: f32[1,128], index: 4, kind: input, shape index: {}]   ;;  %s659_s6 = inlined_call_operand.vmem [shape: f32[1,8], index: 6, kind: input, shape index: {}]   ;;  %s660_s7 = inlined_call_operand.vmem [shape: f32[8,8], index: 7, kind: output, shape index: {}]  }
   0x1   :  { %350 = vmatprep.subr.mxu0 %v478_v0  ;;  %v27_v1 = vld [vmem:[%s653_s1] sm:$0xff]  ;;  %352 = vmatprep.mubr.msk.f32.mxu0 %vm479_vm1, %v478_v0  ;;  %v111_v5 = vld [vmem:[%s655_s3 + $0x8] sm:$0xff]  ;;  %v112_v6 = vld [vmem:[%s655_s3 + $0x10] sm:$0xff] }
   0x2   :  { %v26_v2 = vld [vmem:[%s654_s0] sm:$0xff]  ;;  %351 = vmatpush3.msra.mxu0 %v27_v1  ;;  %425 = vmatprep.subr.bf16.mxu1 %v480_v4  ;;  %v113_v7 = vld [vmem:[%s655_s3 + $0x18] sm:$0xff]  ;;  %v115_v11 = vld [vmem:[%s655_s3 + $0x28] sm:$0xff] }
   0x3   :  { %v110_v3 = vld [vmem:[%s655_s3] sm:$0xff]  ;;  %353 = vmatmul.mubr.msk.f32.vlgmr.msra.gmra.mrb[0].mxu0 %vm35_vm0, %v26_v2  ;;  %387 = vmatprep.mubr.msk.f32.mxu1 %vm479_vm1, %v478_v0  ;;  %v429_v9 = vpack.c.bf16 %v113_v7, %v112_v6  ;;  %v116_v13 = vld [vmem:[%s655_s3 + $0x30] sm:$0xff]  ;;  %v117_v14 = vld [vmem:[%s655_s3 + $0x38] sm:$0xff] }
   0x4   :  { %v426_v8 = vpack.c.bf16 %v111_v5, %v110_v3  ;;  %449 = vmatprep.subr.bf16.mxu0 %v480_v4  ;;  %422 = vmatprep.mubr.msk.f32.mxu0 %vm479_vm1, %v478_v0  ;;  %v114_v10 = vld [vmem:[%s655_s3 + $0x20] sm:$0xff]  ;;  %v435_v15 = vpack.c.bf16 %v117_v14, %v116_v13  ;;  %v119_v17 = vld [vmem:[%s655_s3 + $0x48] sm:$0xff]  ;;  %v120_v19 = vld [vmem:[%s655_s3 + $0x50] sm:$0xff]  ;;  %v297_v3 = vlaneseq }
   0x5   :  { %v432_v12 = vpack.c.bf16 %v115_v11, %v114_v10  ;;  %v118_v16 = vld [vmem:[%s655_s3 + $0x40] sm:$0xff]  ;;  %v121_v20 = vld [vmem:[%s655_s3 + $0x58] sm:$0xff]  ;;  %v123_v23 = vld [vmem:[%s655_s3 + $0x68] sm:$0xff] }
   0x6   :  { %427 = vmatpush3.bf16.msra.mxu1 %v426_v8  ;;  %v438_v18 = vpack.c.bf16 %v119_v17, %v118_v16  ;;  %v441_v21 = vpack.c.bf16 %v121_v20, %v120_v19  ;;  %v122_v22 = vld [vmem:[%s655_s3 + $0x60] sm:$0xff]  ;;  %v124_v25 = vld [vmem:[%s655_s3 + $0x70] sm:$0xff]  ;;  %v125_v26 = vld [vmem:[%s655_s3 + $0x78] sm:$0xff] }
   0x7   :  { %428 = vmatprep.subr.bf16.mxu1 %v480_v4  ;;  %v444_v24 = vpack.c.bf16 %v123_v23, %v122_v22  ;;  %v447_v27 = vpack.c.bf16 %v125_v26, %v124_v25  ;;  %v204_v28 = vld [vmem:[%s656_s5] sm:$0xff]  ;;  %v205_v29 = vld [vmem:[%s656_s5 + $0x8] sm:$0xff]  ;;  %v206_v30 = vld [vmem:[%s656_s5 + $0x10] sm:$0xff] }
   0x8   :  { %v450_v31 = vpack.c.bf16 %v205_v29, %v204_v28  ;;  %v207_v32 = vld [vmem:[%s656_s5 + $0x18] sm:$0xff]  ;;  %v208_v34 = vld [vmem:[%s656_s5 + $0x20] sm:$0xff]  ;;  %v209_v35 = vld [vmem:[%s656_s5 + $0x28] sm:$0xff] }
   0x9   :  { %v453_v33 = vpack.c.bf16 %v207_v32, %v206_v30  ;;  %v456_v36 = vpack.c.bf16 %v209_v35, %v208_v34  ;;  %v210_v37 = vld [vmem:[%s656_s5 + $0x30] sm:$0xff]  ;;  %v211_v38 = vld [vmem:[%s656_s5 + $0x38] sm:$0xff]  ;;  %v212_v40 = vld [vmem:[%s656_s5 + $0x40] sm:$0xff] }
   0xa   :  { %430 = vmatpush3.bf16.msra.mxu1 %v429_v9  ;;  %451 = vmatpush3.bf16.msra.mxu0 %v450_v31  ;;  %v459_v39 = vpack.c.bf16 %v211_v38, %v210_v37  ;;  %v213_v41 = vld [vmem:[%s656_s5 + $0x48] sm:$0xff]  ;;  %v214_v43 = vld [vmem:[%s656_s5 + $0x50] sm:$0xff]  ;;  %v215_v44 = vld [vmem:[%s656_s5 + $0x58] sm:$0xff] }
   0xb   :  { %431 = vmatprep.subr.bf16.mxu1 %v480_v4  ;;  %452 = vmatprep.subr.bf16.mxu0 %v480_v4  ;;  %v462_v42 = vpack.c.bf16 %v213_v41, %v212_v40  ;;  %v465_v45 = vpack.c.bf16 %v215_v44, %v214_v43  ;;  %v216_v46 = vld [vmem:[%s656_s5 + $0x60] sm:$0xff]  ;;  %v217_v47 = vld [vmem:[%s656_s5 + $0x68] sm:$0xff]  ;;  %v218_v54 = vld [vmem:[%s656_s5 + $0x70] sm:$0xff] }
   0xc   :  { %v468_v48 = vpack.c.bf16 %v217_v47, %v216_v46  ;;  %v310_v49 = vld [vmem:[%s657_s2] ss:$0 sm:$0xff]  ;;  %v219_v55 = vld [vmem:[%s656_s5 + $0x78] sm:$0xff] }
   0xd   :  { %v471_v56 = vpack.c.bf16 %v219_v55, %v218_v54  ;;  %v312_v57 = vld [vmem:[%s658_s4] ss:$0 sm:$0xff] }
   0xe   :  { %433 = vmatpush3.bf16.msra.mxu1 %v432_v12  ;;  %454 = vmatpush3.bf16.msra.mxu0 %v453_v33  ;;  %v313_v62 = vld [vmem:[%s659_s6] ss:$0 sm:$0xff] }
   0xf   :  { %434 = vmatprep.subr.bf16.mxu1 %v480_v4  ;;  %455 = vmatprep.subr.bf16.mxu0 %v480_v4 }
  0x12   :  { %436 = vmatpush3.bf16.msra.mxu1 %v435_v15  ;;  %457 = vmatpush3.bf16.msra.mxu0 %v456_v36 }
  0x13   :  { %437 = vmatprep.subr.bf16.mxu1 %v480_v4  ;;  %458 = vmatprep.subr.bf16.mxu0 %v480_v4 }
  0x16   :  { %439 = vmatpush3.bf16.msra.mxu1 %v438_v18  ;;  %460 = vmatpush3.bf16.msra.mxu0 %v459_v39 }
  0x17   :  { %440 = vmatprep.subr.bf16.mxu1 %v480_v4  ;;  %461 = vmatprep.subr.bf16.mxu0 %v480_v4 }
  0x1a   :  { %442 = vmatpush3.bf16.msra.mxu1 %v441_v21  ;;  %463 = vmatpush3.bf16.msra.mxu0 %v462_v42 }
  0x1b   :  { %443 = vmatprep.subr.bf16.mxu1 %v480_v4  ;;  %464 = vmatprep.subr.bf16.mxu0 %v480_v4 }
  0x1e   :  { %445 = vmatpush3.bf16.msra.mxu1 %v444_v24  ;;  %466 = vmatpush3.bf16.msra.mxu0 %v465_v45 }
  0x1f   :  { %446 = vmatprep.subr.bf16.mxu1 %v480_v4  ;;  %467 = vmatprep.subr.bf16.mxu0 %v480_v4 }
  0x22   :  { %448 = vmatpush3.bf16.msra.mxu1 %v447_v27  ;;  %469 = vmatpush3.bf16.msra.mxu0 %v468_v48 }
  0x23   :  { %470 = vmatprep.subr.bf16.mxu0 %v480_v4  ;;  %v298_v4 = vand.u32 127, %v297_v3 }
  0x25   :  { %vm299_vm2 = vcmp.eq.s32.totalorder %v298_v4, 1 }
  0x26   :  { %472 = vmatpush3.bf16.msra.mxu0 %v471_v56 }
  0xd6   :  { %v105_v50 = vpop.f32.mrb[0].mxu0 }
  0xd7   :  { %v106_v51 = vadd.f32 %v310_v49, %v105_v50  ;;  %v354_v52 = vpop.f32.mrb[1].mxu0 }
  0xd9   :  { %v109_v53 = vmax.f32 %v106_v51, 0.0 }
  0xdb   :  { %388 = vmatmul.mubr.f32.vlgmr.msra.gmra.mrb[0].mxu1 %v109_v53 }
 0x1ae   :  { %v199_v58 = vpop.f32.mrb[0].mxu1 }
 0x1af   :  { %v200_v59 = vadd.f32 %v312_v57, %v199_v58  ;;  %v389_v60 = vpop.f32.mrb[1].mxu1 }
 0x1b1   :  { %v203_v61 = vmax.f32 %v200_v59, 0.0 }
 0x1b3   :  { %423 = vmatmul.mubr.f32.vlgmr.msra.gmra.mrb[2].mxu0 %v203_v61 }
 0x286   :  { %v293_v63 = vpop.f32.mrb[2].mxu0 }
 0x287   :  { %v294_v0 = vadd.f32 %v313_v62, %v293_v63  ;;  %v424_v1 = vpop.f32.mrb[3].mxu0 }
 0x289   :  { %v300_v2 = vmul.f32 1.442695, %v294_v0 }
 0x28b   :  { %476 = vpow2.f32 %v300_v2 }
 0x295   :  { %v477_v5 = vpop.eup %476 }
 0x296   :  { %v304_v6 = vsel %vm299_vm2, %v477_v5, %v294_v0 }
 0x297   :  { %305 = vst.msk [vmem:[%s660_s7] sm:$0xff] %vm35_vm0, %v304_v6 }

</bundles_post_ra>
